<compile_context>
chip_gen: v7x
topology: tpu7x:2x2x1
jax: 0.10.0
libtpu: 0.0.40
codegen_flags: <defaults>
</compile_context>

<pallas_src>
import jax
import jax.numpy as jnp
from jax.experimental import pallas as pl
from jax.experimental.pallas import tpu as pltpu


def _identity_alias_kernel(mean_hbm, var_hbm, out_mean_hbm, out_var_hbm, flag_smem):
    # Outputs are aliased to the inputs (input_output_aliases={0: 0, 1: 1}); the
    # identity therefore requires no data movement at all: no tile DMA, no
    # vector loads/stores. The refs live in HBM (pl.ANY) and are left untouched.
    flag_smem[0] = jnp.int32(1)


def adf_identity(in_mean, in_var):
    """ADF Identity: returns (in_mean, in_var) via a zero-copy Pallas kernel."""
    assert in_mean.shape == in_var.shape, "mean/var must share a shape"

    out_mean, out_var = pl.pallas_call(
        _identity_alias_kernel,
        out_shape=(
            jax.ShapeDtypeStruct(in_mean.shape, in_mean.dtype),
            jax.ShapeDtypeStruct(in_var.shape, in_var.dtype),
        ),
        in_specs=[
            pl.BlockSpec(memory_space=pl.ANY),
            pl.BlockSpec(memory_space=pl.ANY),
        ],
        out_specs=(
            pl.BlockSpec(memory_space=pl.ANY),
            pl.BlockSpec(memory_space=pl.ANY),
        ),
        scratch_shapes=[pltpu.SMEM((1,), jnp.int32)],
        input_output_aliases={0: 0, 1: 1},
    )(in_mean, in_var)
    return out_mean, out_var


if __name__ == "__main__":
    key = jax.random.PRNGKey(0)
    k_mean, k_var = jax.random.split(key)
    # NCHW-like small shapes: batch=2, channels=4, spatial=16x16
    shape = (2, 4, 16, 16)
    in_mean = jax.random.normal(k_mean, shape, dtype=jnp.float32)
    # Variances are non-negative.
    in_var = jax.random.uniform(k_var, shape, dtype=jnp.float32)

    # Eager call.
    out_mean, out_var = adf_identity(in_mean, in_var)
    jax.block_until_ready((out_mean, out_var))

    assert out_mean.shape == shape and out_var.shape == shape
    assert out_mean.dtype == in_mean.dtype and out_var.dtype == in_var.dtype
    assert jnp.array_equal(out_mean, in_mean)
    assert jnp.array_equal(out_var, in_var)

    # Jitted call (typical fused usage: aliasing makes the identity free).
    out_mean_j, out_var_j = jax.jit(adf_identity)(in_mean, in_var)
    jax.block_until_ready((out_mean_j, out_var_j))
    assert jnp.array_equal(out_mean_j, in_mean)
    assert jnp.array_equal(out_var_j, in_var)

    print("KERNEL_OK")
</pallas_src>

<mosaic_0001>
module attributes {stable_mosaic.version = 11 : i64} {
  func.func @_identity_alias_kernel(%arg0: memref<2x4x16x16xf32, #tpu.memory_space<any>>, %arg1: memref<2x4x16x16xf32, #tpu.memory_space<any>>, %arg2: memref<2x4x16x16xf32, #tpu.memory_space<any>>, %arg3: memref<2x4x16x16xf32, #tpu.memory_space<any>>, %arg4: memref<1xi32, #tpu.memory_space<smem>>) attributes {dimension_semantics = [], scalar_prefetch = 0 : i64, scratch_operands = 1 : i64, tpu.core_type = #tpu.core_type<tc>} {
    %c1_i32 = arith.constant 1 : i32
    %c0 = arith.constant 0 : index
    %0 = memref.load %arg4[%c0] : memref<1xi32, #tpu.memory_space<smem>>
    memref.store %c1_i32, %arg4[%c0] : memref<1xi32, #tpu.memory_space<smem>>
    return
  }
}

</mosaic_0001>

<bundles_post_ra>
// kernel: tpu_custom_call.1
= control target key start
LH: loop header
LB: loop body
LE: loop exit
PB: predicated region body
PF: predicated region fallthrough
CT: control target
= control target key end

     0   :  { %s31_s0 = inlined_call_operand.hbm [shape: f32[2,4,16,16], index: 0, kind: input, shape index: {}, may-alias: {0,2}]   ;;  %s32_s1 = inlined_call_operand.hbm [shape: f32[2,4,16,16], index: 1, kind: input, shape index: {}, may-alias: {1,3}]   ;;  %s33_s2 = inlined_call_operand.hbm [shape: f32[2,4,16,16], index: 2, kind: output, shape index: {0}, may-alias: {0,2}]   ;;  %s34_s3 = inlined_call_operand.hbm [shape: f32[2,4,16,16], index: 3, kind: output, shape index: {1}, may-alias: {1,3}]  }

</bundles_post_ra>
